<compile_context>
chip_gen: v7x
topology: tpu7x:2x2x1
jax: 0.10.0
libtpu: 0.0.40
codegen_flags: <defaults>
</compile_context>

<pallas_src>
import jax
import jax.numpy as jnp
from jax.experimental import pallas as pl
from jax.experimental.pallas import tpu as pltpu

SMOOTH = 1e-5


def _round_up(x, m):
    return (x + m - 1) // m * m


def _sublane(dtype):
    # second-minor packing: f32 -> 8, bf16 -> 16, int8/fp8 -> 32
    return max(8, 32 // jnp.dtype(dtype).itemsize)


def _chip_budget():
    """(per-input block byte budget, scoped VMEM limit) by TPU generation."""
    kind = ""
    try:
        kind = jax.devices()[0].device_kind.lower()
    except Exception:
        pass
    if "v7" in kind:                              # 64 MiB physical VMEM
        return 2 * 1024 * 1024, 48 * 1024 * 1024
    return 4 * 1024 * 1024, 64 * 1024 * 1024      # v5e / v6e: 128 MiB physical


def _pick_chunk(spatial_tile):
    for c in (512, 256, 128):
        if spatial_tile % c == 0:
            return c
    raise ValueError(f"spatial_tile {spatial_tile} not a multiple of 128")


def _make_row_sums_kernel(*, hw, spb, spatial_tile, chunk, row_tile, need_mask):
    """Per-(n,c)-row partial sums of intersection and union over one spatial split."""
    n_chunks = spatial_tile // chunk

    def kernel(pred_ref, gt_ref, inter_ref, union_ref, inter_acc, union_acc):
        s = pl.program_id(2)

        @pl.when(s == 0)
        def _init():
            inter_acc[...] = jnp.zeros_like(inter_acc)
            union_acc[...] = jnp.zeros_like(union_acc)

        if need_mask:
            # Element offset of this block along the *unclamped* spatial axis;
            # fully out-of-range (index-clamped) blocks get limit <= 0 -> all
            # columns masked, so they contribute nothing.
            start = (pl.program_id(0) * spb + s) * spatial_tile
            limit = hw - start
            col = jax.lax.broadcasted_iota(jnp.int32, (row_tile, chunk), 1)

        def body(ci, carry):
            off = pl.multiple_of(ci * chunk, chunk)
            # Cast to f32 only after the (possibly narrow dtype) HBM->VMEM DMA.
            # Sigmoid stays f32 (exact vs. the reference; kernel is mem-bound).
            p = jax.nn.sigmoid(pred_ref[:, pl.ds(off, chunk)].astype(jnp.float32))
            g = gt_ref[:, pl.ds(off, chunk)].astype(jnp.float32)
            if need_mask:
                valid = col < (limit - off)
                p = jnp.where(valid, p, 0.0)
                g = jnp.where(valid, g, 0.0)
            # Pure element-wise (VPU) accumulation in the hot loop.
            inter_acc[...] += p * g
            union_acc[...] += p + g        # sum(p) + sum(g) == sum(p + g)
            return carry

        jax.lax.fori_loop(0, n_chunks, body, 0,
                          unroll=True if n_chunks <= 8 else 4)

        @pl.when(s == pl.num_programs(2) - 1)
        def _finalize():
            # Single cross-lane (XLU) reduce, once per (split, row-block).
            inter_ref[0] = jnp.sum(inter_acc[...], axis=-1, keepdims=True)
            union_ref[0] = jnp.sum(union_acc[...], axis=-1, keepdims=True)

    return kernel


def soft_dice_loss(y_pred, y_true, num_classes, *, spatial_tile=None):
    """1 - mean dice over classes 1..num_classes-1 (sigmoid activation)."""
    N, C, H, W = y_pred.shape
    assert C == num_classes
    assert num_classes >= 2, "SoftDiceLoss needs at least one foreground class"
    nc, hw = N * C, H * W

    pred2d = y_pred.reshape(nc, hw)   # free reshape, no dtype widening in HBM
    gt2d = y_true.reshape(nc, hw)

    block_budget, vmem_limit = _chip_budget()
    elem_bytes = max(pred2d.dtype.itemsize, gt2d.dtype.itemsize)
    row_sub = max(_sublane(pred2d.dtype), _sublane(gt2d.dtype))

    # ---- spatial tile: prefer long, lane-aligned DMA segments ---------------
    if spatial_tile is None:
        hw128 = _round_up(hw, 128)
        if hw128 >= 512:
            cap = max(512, (block_budget // (row_sub * elem_bytes)) // 512 * 512)
            spatial_tile = min(_round_up(hw, 512), cap)
        else:
            spatial_tile = hw128
    assert spatial_tile % 128 == 0
    chunk = _pick_chunk(spatial_tile)
    n_spatial_blocks = pl.cdiv(hw, spatial_tile)

    # ---- row tile: grow (sublane multiples) until the block hits the budget -
    if nc <= row_sub:
        row_tile = nc
    else:
        row_tile = row_sub
        max_rows = _round_up(nc, row_sub)
        while (row_tile * 2 <= max_rows
               and 2 * row_tile * spatial_tile * elem_bytes <= block_budget):
            row_tile *= 2
    n_row_blocks = pl.cdiv(nc, row_tile)

    # ---- megacore (v7x): guarantee >= 2 blocks on a "parallel" axis ---------
    n_splits = 2 if (n_row_blocks == 1 and n_spatial_blocks >= 2) else 1
    spb = pl.cdiv(n_spatial_blocks, n_splits)       # spatial steps per split
    need_mask = (n_splits * spb * spatial_tile) != hw

    kernel = _make_row_sums_kernel(hw=hw, spb=spb, spatial_tile=spatial_tile,
                                   chunk=chunk, row_tile=row_tile,
                                   need_mask=need_mask)

    def in_index(p, r, s):
        # Clamp so an over-covering last split never issues an OOB block DMA;
        # the in-kernel column mask zeroes that (re-fetched) block's contribution.
        return (r, jnp.minimum(p * spb + s, n_spatial_blocks - 1))

    out_index = lambda p, r, s: (p, r, 0)

    cost = pl.CostEstimate(
        flops=5 * nc * hw,
        transcendentals=nc * hw,                      # one exp per sigmoid
        bytes_accessed=(pred2d.size * pred2d.dtype.itemsize
                        + gt2d.size * gt2d.dtype.itemsize
                        + 2 * n_splits * nc * 4),
    )

    inter, union = pl.pallas_call(
        kernel,
        out_shape=(jax.ShapeDtypeStruct((n_splits, nc, 1), jnp.float32),
                   jax.ShapeDtypeStruct((n_splits, nc, 1), jnp.float32)),
        grid_spec=pltpu.PrefetchScalarGridSpec(
            num_scalar_prefetch=0,
            grid=(n_splits, n_row_blocks, spb),
            in_specs=[
                pl.BlockSpec((row_tile, spatial_tile), in_index),
                pl.BlockSpec((row_tile, spatial_tile), in_index),
            ],
            out_specs=[
                pl.BlockSpec((1, row_tile, 1), out_index),
                pl.BlockSpec((1, row_tile, 1), out_index),
            ],
            scratch_shapes=[
                pltpu.VMEM((row_tile, chunk), jnp.float32),   # intersection acc
                pltpu.VMEM((row_tile, chunk), jnp.float32),   # union (p+g) acc
            ],
        ),
        compiler_params=pltpu.CompilerParams(
            dimension_semantics=("parallel", "parallel", "arbitrary"),
            vmem_limit_bytes=vmem_limit,
        ),
        cost_estimate=cost,
    )(pred2d, gt2d)

    # Tiny epilogue on <= 2*N*C scalars: combine splits, exact dice division,
    # drop class 0, batch mean, class mean.
    inter = jnp.sum(inter, axis=0)[:, 0]                     # (nc,)
    union = jnp.sum(union, axis=0)[:, 0]
    dice = (2.0 * inter + SMOOTH) / (union + SMOOTH)
    dice = dice.reshape(N, C)[:, 1:]
    # TODO(synk): class-0 rows are still fetched (~1/C of HBM traffic); a
    # scalar-prefetch row-block table could skip them when C is small.
    return 1.0 - jnp.sum(dice) / (N * (num_classes - 1))


def _reference_soft_dice_loss(y_pred, y_true, num_classes):
    # Pure-JAX mirror of the PyTorch module (all math in f32) for verification.
    y_pred = y_pred.astype(jnp.float32)
    y_true = y_true.astype(jnp.float32)
    N = y_pred.shape[0]
    class_dice = []
    for i in range(1, num_classes):
        p = jax.nn.sigmoid(y_pred[:, i:i + 1]).reshape(N, -1)
        g = y_true[:, i:i + 1].reshape(N, -1)
        inter = jnp.sum(p * g, axis=1)
        unionset = jnp.sum(p, axis=1) + jnp.sum(g, axis=1)
        loss = (2.0 * inter + SMOOTH) / (unionset + SMOOTH)
        class_dice.append(jnp.sum(loss) / N)
    mean_dice = sum(class_dice) / len(class_dice)
    return 1.0 - mean_dice


if __name__ == "__main__":
    num_classes = 4
    key = jax.random.PRNGKey(0)
    k1, k2, k3, k4 = jax.random.split(key, 4)

    # 1) main case: bf16 inputs, (2, 4, 16, 16), single-block fast path
    N, C, H, W = 2, num_classes, 16, 16
    y_pred = jax.random.normal(k1, (N, C, H, W), jnp.float32).astype(jnp.bfloat16)
    y_true = jax.random.bernoulli(k2, 0.3, (N, C, H, W)).astype(jnp.bfloat16)
    ref = _reference_soft_dice_loss(y_pred, y_true, num_classes)
    loss = jax.block_until_ready(soft_dice_loss(y_pred, y_true, num_classes))
    assert jnp.allclose(loss, ref, atol=1e-4, rtol=1e-4), (loss, ref)

    # 2) same inputs, forced small spatial tile -> two-way spatial split
    #    ("parallel" leading axis: both TensorCores active on v7x)
    loss_split = jax.block_until_ready(
        soft_dice_loss(y_pred, y_true, num_classes, spatial_tile=128))
    assert jnp.allclose(loss_split, ref, atol=1e-4, rtol=1e-4), (loss_split, ref)

    # 3) ragged spatial extent (H*W = 324, not a multiple of 128) -> exercises
    #    the in-kernel column mask, the clamped over-covering split block, and
    #    the multi-step spatial accumulation.
    N2, H2, W2 = 2, 18, 18
    y_pred2 = jax.random.normal(k3, (N2, C, H2, W2), jnp.float32)
    y_true2 = jax.random.bernoulli(k4, 0.3, (N2, C, H2, W2)).astype(jnp.float32)
    ref2 = _reference_soft_dice_loss(y_pred2, y_true2, num_classes)
    loss2 = jax.block_until_ready(soft_dice_loss(y_pred2, y_true2, num_classes))
    assert jnp.allclose(loss2, ref2, atol=1e-4, rtol=1e-4), (loss2, ref2)
    loss2_split = jax.block_until_ready(
        soft_dice_loss(y_pred2, y_true2, num_classes, spatial_tile=128))
    assert jnp.allclose(loss2_split, ref2, atol=1e-4, rtol=1e-4), (loss2_split, ref2)

    print("KERNEL_OK")
</pallas_src>

<mosaic_0001>
module attributes {stable_mosaic.version = 11 : i64} {
  func.func @kernel(%arg0: i32, %arg1: i32, %arg2: i32, %arg3: memref<8x256xbf16, #tpu.memory_space<vmem>>, %arg4: memref<8x256xbf16, #tpu.memory_space<vmem>>, %arg5: memref<1x8x1xf32, #tpu.memory_space<vmem>>, %arg6: memref<1x8x1xf32, #tpu.memory_space<vmem>>, %arg7: memref<8x256xf32, #tpu.memory_space<vmem>>, %arg8: memref<8x256xf32, #tpu.memory_space<vmem>>) attributes {dimension_semantics = [#tpu.dimension_semantics<parallel>, #tpu.dimension_semantics<parallel>, #tpu.dimension_semantics<arbitrary>], iteration_bounds = array<i64: 1, 1, 1>, scalar_prefetch = 0 : i64, scratch_operands = 2 : i64, tpu.core_type = #tpu.core_type<tc>, window_params = [{transform_indices = @transform_0, window_bounds = array<i64: 8, 256>}, {transform_indices = @transform_1, window_bounds = array<i64: 8, 256>}, {transform_indices = @transform_2, window_bounds = array<i64: 1, 8, 1>}, {transform_indices = @transform_3, window_bounds = array<i64: 1, 8, 1>}]} {
    %c0_i32 = arith.constant 0 : i32
    %0 = arith.cmpi eq, %arg2, %c0_i32 : i32
    %1 = arith.extui %0 : i1 to i32
    %c0_i32_0 = arith.constant 0 : i32
    %2 = arith.cmpi ne, %1, %c0_i32_0 : i32
    scf.if %2 {
      %cst_13 = arith.constant 0.000000e+00 : f32
      %27 = vector.broadcast %cst_13 : f32 to vector<8x256xf32>
      %c0_14 = arith.constant 0 : index
      %c0_15 = arith.constant 0 : index
      %28 = vector.load %arg7[%c0_14, %c0_15] : memref<8x256xf32, #tpu.memory_space<vmem>>, vector<8x256xf32>
      tpu.vector_store %arg7[%c0_14, %c0_15], %27 {strides = array<i32>} : memref<8x256xf32, #tpu.memory_space<vmem>>, vector<8x256xf32>,
      %cst_16 = arith.constant 0.000000e+00 : f32
      %29 = vector.broadcast %cst_16 : f32 to vector<8x256xf32>
      %c0_17 = arith.constant 0 : index
      %c0_18 = arith.constant 0 : index
      %30 = vector.load %arg8[%c0_17, %c0_18] : memref<8x256xf32, #tpu.memory_space<vmem>>, vector<8x256xf32>
      tpu.vector_store %arg8[%c0_17, %c0_18], %29 {strides = array<i32>} : memref<8x256xf32, #tpu.memory_space<vmem>>, vector<8x256xf32>,
    } else {
    }
    %c0_i32_1 = arith.constant 0 : i32
    %c256_i32 = arith.constant 256 : i32
    %3 = arith.muli %c0_i32_1, %c256_i32 : i32
    %4 = tpu.assume_multiple %3, 256 : i32
    %c0 = arith.constant 0 : index
    %5 = arith.index_cast %4 : i32 to index
    %6 = vector.load %arg3[%c0, %5] : memref<8x256xbf16, #tpu.memory_space<vmem>>, vector<8x256xbf16>
    %7 = arith.extf %6 : vector<8x256xbf16> to vector<8x256xf32>
    %8 = arith.negf %7 : vector<8x256xf32>
    %9 = math.exp %8 : vector<8x256xf32>
    %cst = arith.constant 1.000000e+00 : f32
    %10 = vector.broadcast %cst : f32 to vector<8x256xf32>
    %11 = arith.addf %10, %9 : vector<8x256xf32>
    %12 = arith.divf %10, %11 : vector<8x256xf32>
    %c0_2 = arith.constant 0 : index
    %13 = arith.index_cast %4 : i32 to index
    %14 = vector.load %arg4[%c0_2, %13] : memref<8x256xbf16, #tpu.memory_space<vmem>>, vector<8x256xbf16>
    %15 = arith.extf %14 : vector<8x256xbf16> to vector<8x256xf32>
    %c0_3 = arith.constant 0 : index
    %c0_4 = arith.constant 0 : index
    %16 = vector.load %arg7[%c0_3, %c0_4] : memref<8x256xf32, #tpu.memory_space<vmem>>, vector<8x256xf32>
    %17 = arith.mulf %12, %15 : vector<8x256xf32>
    %18 = arith.addf %16, %17 : vector<8x256xf32>
    %c0_5 = arith.constant 0 : index
    %c0_6 = arith.constant 0 : index
    %19 = vector.load %arg7[%c0_5, %c0_6] : memref<8x256xf32, #tpu.memory_space<vmem>>, vector<8x256xf32>
    tpu.vector_store %arg7[%c0_5, %c0_6], %18 {strides = array<i32>} : memref<8x256xf32, #tpu.memory_space<vmem>>, vector<8x256xf32>,
    %c0_7 = arith.constant 0 : index
    %c0_8 = arith.constant 0 : index
    %20 = vector.load %arg8[%c0_7, %c0_8] : memref<8x256xf32, #tpu.memory_space<vmem>>, vector<8x256xf32>
    %21 = arith.addf %12, %15 : vector<8x256xf32>
    %22 = arith.addf %20, %21 : vector<8x256xf32>
    %c0_9 = arith.constant 0 : index
    %c0_10 = arith.constant 0 : index
    %23 = vector.load %arg8[%c0_9, %c0_10] : memref<8x256xf32, #tpu.memory_space<vmem>>, vector<8x256xf32>
    tpu.vector_store %arg8[%c0_9, %c0_10], %22 {strides = array<i32>} : memref<8x256xf32, #tpu.memory_space<vmem>>, vector<8x256xf32>,
    %c1_i32 = arith.constant 1 : i32
    %c0_i32_11 = arith.constant 0 : i32
    %24 = arith.cmpi eq, %arg2, %c0_i32_11 : i32
    %25 = arith.extui %24 : i1 to i32
    %c0_i32_12 = arith.constant 0 : i32
    %26 = arith.cmpi ne, %25, %c0_i32_12 : i32
    scf.if %26 {
      %c0_13 = arith.constant 0 : index
      %c0_14 = arith.constant 0 : index
      %27 = vector.load %arg7[%c0_13, %c0_14] : memref<8x256xf32, #tpu.memory_space<vmem>>, vector<8x256xf32>
      %cst_15 = arith.constant dense<0.000000e+00> : vector<8xf32>
      %28 = vector.multi_reduction <add>, %27, %cst_15 [1] : vector<8x256xf32> to vector<8xf32>
      %29 = vector.shape_cast %28 : vector<8xf32> to vector<8x1xf32>
      %c0_16 = arith.constant 0 : index
      %c0_17 = arith.constant 0 : index
      %c0_18 = arith.constant 0 : index
      %30 = vector.load %arg5[%c0_16, %c0_17, %c0_18] : memref<1x8x1xf32, #tpu.memory_space<vmem>>, vector<1x8x1xf32>
      %31 = vector.shape_cast %30 : vector<1x8x1xf32> to vector<8x1xf32>
      %32 = vector.shape_cast %29 : vector<8x1xf32> to vector<1x8x1xf32>
      tpu.vector_store %arg5[%c0_16, %c0_17, %c0_18], %32 {strides = array<i32>} : memref<1x8x1xf32, #tpu.memory_space<vmem>>, vector<1x8x1xf32>,
      %c0_19 = arith.constant 0 : index
      %c0_20 = arith.constant 0 : index
      %33 = vector.load %arg8[%c0_19, %c0_20] : memref<8x256xf32, #tpu.memory_space<vmem>>, vector<8x256xf32>
      %cst_21 = arith.constant dense<0.000000e+00> : vector<8xf32>
      %34 = vector.multi_reduction <add>, %33, %cst_21 [1] : vector<8x256xf32> to vector<8xf32>
      %35 = vector.shape_cast %34 : vector<8xf32> to vector<8x1xf32>
      %c0_22 = arith.constant 0 : index
      %c0_23 = arith.constant 0 : index
      %c0_24 = arith.constant 0 : index
      %36 = vector.load %arg6[%c0_22, %c0_23, %c0_24] : memref<1x8x1xf32, #tpu.memory_space<vmem>>, vector<1x8x1xf32>
      %37 = vector.shape_cast %36 : vector<1x8x1xf32> to vector<8x1xf32>
      %38 = vector.shape_cast %35 : vector<8x1xf32> to vector<1x8x1xf32>
      tpu.vector_store %arg6[%c0_22, %c0_23, %c0_24], %38 {strides = array<i32>} : memref<1x8x1xf32, #tpu.memory_space<vmem>>, vector<1x8x1xf32>,
    } else {
    }
    return
  }
  func.func @transform_0(%arg0: i32, %arg1: i32, %arg2: i32) -> (i32, i32) {
    %c1_i32 = arith.constant 1 : i32
    %0 = arith.muli %arg0, %c1_i32 : i32
    %1 = arith.addi %0, %arg2 : i32
    %c0_i32 = arith.constant 0 : i32
    %2 = arith.minsi %1, %c0_i32 : i32
    %c0_i32_0 = arith.constant 0 : i32
    return %arg1, %2 : i32, i32
  }
  func.func @transform_1(%arg0: i32, %arg1: i32, %arg2: i32) -> (i32, i32) {
    %c1_i32 = arith.constant 1 : i32
    %0 = arith.muli %arg0, %c1_i32 : i32
    %1 = arith.addi %0, %arg2 : i32
    %c0_i32 = arith.constant 0 : i32
    %2 = arith.minsi %1, %c0_i32 : i32
    %c0_i32_0 = arith.constant 0 : i32
    return %arg1, %2 : i32, i32
  }
  func.func @transform_2(%arg0: i32, %arg1: i32, %arg2: i32) -> (i32, i32, i32) {
    %c0_i32 = arith.constant 0 : i32
    %c0_i32_0 = arith.constant 0 : i32
    return %arg0, %arg1, %c0_i32 : i32, i32, i32
  }
  func.func @transform_3(%arg0: i32, %arg1: i32, %arg2: i32) -> (i32, i32, i32) {
    %c0_i32 = arith.constant 0 : i32
    %c0_i32_0 = arith.constant 0 : i32
    return %arg0, %arg1, %c0_i32 : i32, i32, i32
  }
}

</mosaic_0001>

<bundles_post_ra>
// kernel: tpu_custom_call.1
= control target key start
LH: loop header
LB: loop body
LE: loop exit
PB: predicated region body
PF: predicated region fallthrough
CT: control target
= control target key end

     0   :  { %9 = vsyncpa [#allocation5], 0  ;;  %s335_s0 = inlined_call_operand.hbm [shape: bf16[8,256], index: 0, kind: input, shape index: {}]   ;;  %s336_s1 = inlined_call_operand.hbm [shape: bf16[8,256], index: 1, kind: input, shape index: {}]   ;;  %s337_s2 = inlined_call_operand.hbm [shape: f32[1,8,1], index: 2, kind: output, shape index: {0}]   ;;  %s338_s3 = inlined_call_operand.hbm [shape: f32[1,8,1], index: 3, kind: output, shape index: {1}]  }
   0x1   :  { %10 = vsyncpa [#allocation8], 0 }
   0x2   :  { %11 = vsyncpa [#allocation6], 0 }
   0x3   :  { %12 = vsyncpa [#allocation11], 0  ;;  %s261_s12 = smov [#allocation4]   ;;  %s262_s14 = smov [#allocation7]  }
   0x4   :  { %s25_s13 = sshll.u32 %s261_s12, 4  ;;  %s41_s15 = sshll.u32 %s262_s14, 4  ;;  %s26_s13 = int_to_ptr.vmem [resolvable:$true] %s25_s13  ;;  %s42_s15 = int_to_ptr.vmem [resolvable:$true] %s41_s15 }
   0x5   :  { %s165_s18 = scalar_lea.hbm %s335_s0, 128 }
   0x6   :  { %p166_p0 = scmp.ne.s32.totalorder %s335_s0, %s165_s18  ;;  %p169_p1 = scmp.lt.u32.totalorder %s165_s18, %s335_s0 }
   0x8   :  { %p171_p2 = pnand %p169_p1, %p166_p0 }
   0xa   :  { %174 = shalt.err (!%p171_p2)
}
   0xb   :  { %s175_s23 = scalar_lea.vmem %s26_s13, 128  ;;  %p180_p4 = scmp.lt.s32.totalorder %s26_s13, %s26_s13 }
   0xc   :  { %p176_p3 = scmp.ne.s32.totalorder %s26_s13, %s175_s23  ;;  %p181_p5 = scmp.lt.s32.totalorder %s175_s23, %s175_s23 }
   0xe   :  { %p182_p6 = por %p181_p5, %p180_p4 }
  0x10   :  { %p183_p7 = pnand %p182_p6, %p176_p3 }
  0x12   :  { %186 = shalt.err (!%p183_p7)
}
  0x13   :  { %28 = dma.hbm_to_vmem [thread:$0]  %s335_s0, 128, %s26_s13, [#allocation5]  }
  0x14   :  { %s187_s28 = scalar_lea.hbm %s336_s1, 128 }
  0x15   :  { %p188_p8 = scmp.ne.s32.totalorder %s336_s1, %s187_s28  ;;  %p191_p9 = scmp.lt.u32.totalorder %s187_s28, %s336_s1 }
  0x17   :  { %p193_p10 = pnand %p191_p9, %p188_p8 }
  0x19   :  { %196 = shalt.err (!%p193_p10)
}
  0x1a   :  { %s197_s6 = scalar_lea.vmem %s42_s15, 128  ;;  %p202_p12 = scmp.lt.s32.totalorder %s42_s15, %s42_s15 }
  0x1b   :  { %p198_p11 = scmp.ne.s32.totalorder %s42_s15, %s197_s6  ;;  %p203_p13 = scmp.lt.s32.totalorder %s197_s6, %s197_s6 }
  0x1d   :  { %p204_p0 = por %p203_p13, %p202_p12 }
  0x1f   :  { %p205_p1 = pnand %p204_p0, %p198_p11 }
  0x21   :  { %208 = shalt.err (!%p205_p1)
}
  0x22   :  { %44 = dma.hbm_to_vmem [thread:$0]  %s336_s1, 128, %s42_s15, [#allocation8]  }
  0x23   :  { %253 = dma.done.wait [#allocation5], 128  }
  0x24   :  { %254 = vsyncadd [#allocation5], 4294967168 }
  0x25   :  { %255 = dma.done.wait [#allocation8], 128  }
  0x26   :  { %256 = vsyncadd [#allocation8], 4294967168  ;;  %v67_v0 = vld [vmem:[#allocation4] sm:$0xff]  ;;  %v82_v9 = vld [vmem:[#allocation7] sm:$0xff]  ;;  %s263_s1 = smov [#allocation9]   ;;  %vm109_vm0 = vcmask 7168  }
  0x27   :  { %v68_v1 = vunpack.c.l.bf16 %v67_v0  ;;  %v69_v2 = vunpack.c.h.bf16 %v67_v0  ;;  %v83_v10 = vunpack.c.l.bf16 %v82_v9  ;;  %v84_v11 = vunpack.c.h.bf16 %v82_v9  ;;  %s123_s8 = sshll.u32 %s263_s1, 4  ;;  %s264_s9 = smov [#allocation10]   ;;  %s124_s8 = int_to_ptr.vmem [resolvable:$true] %s123_s8 }
  0x28   :  { %s133_s10 = sshll.u32 %s264_s9, 4  ;;  %s209_s11 = scalar_lea.vmem %s124_s8, 128  ;;  %s134_s10 = int_to_ptr.vmem [resolvable:$true] %s133_s10 }
  0x29   :  { %v151_v3 = vmul.f32 -1.442695, %v68_v1  ;;  %v152_v4 = vmul.f32 -1.442695, %v69_v2  ;;  %p210_p2 = scmp.ne.s32.totalorder %s124_s8, %s209_s11  ;;  %p214_p3 = scmp.lt.s32.totalorder %s124_s8, %s124_s8 }
  0x2a   :  { %p215_p4 = scmp.lt.s32.totalorder %s209_s11, %s209_s11 }
  0x2b   :  { %157 = vpow2.f32 %v151_v3 }
  0x2c   :  { %159 = vpow2.f32 %v152_v4  ;;  %p216_p5 = por %p215_p4, %p214_p3 }
  0x2e   :  { %p217_p6 = pnand %p216_p5, %p210_p2 }
  0x35   :  { %v158_v5 = vpop.eup %157 }
  0x36   :  { %v160_v6 = vpop.eup %159  ;;  %v76_v7 = vadd.f32 1.0, %v158_v5 }
  0x37   :  { %v77_v8 = vadd.f32 1.0, %v160_v6 }
  0x38   :  { %161 = vrcp.f32 %v76_v7 }
  0x39   :  { %163 = vrcp.f32 %v77_v8 }
  0x42   :  { %v162_v12 = vpop.eup %161 }
  0x43   :  { %v164_v13 = vpop.eup %163  ;;  %v87_v14 = vmul.f32 %v162_v12, %v83_v10  ;;  %v95_v16 = vadd.f32 %v162_v12, %v83_v10 }
  0x44   :  { %v88_v15 = vmul.f32 %v164_v13, %v84_v11  ;;  %v96_v17 = vadd.f32 %v164_v13, %v84_v11 }
  0x46   :  { %v106_v18 = vadd.f32 %v88_v15, %v87_v14  ;;  %v113_v19 = vadd.f32 %v96_v17, %v95_v16 }
  0x48   :  { %107 = vadd.xlane.f32.xlu0 %v106_v18 }
  0x4c   :  { %114 = vadd.xlane.f32.xlu0 %v113_v19 }
  0xd5   :  { %v108_v20 = vpop.xlane.xlu0 %107 }
  0xd6   :  { %110 = vst.msk [vmem:[#allocation9] sm:$0xff] %vm109_vm0, %v108_v20 }
  0xd7   :  { %220 = shalt.err (!%p217_p6)
}
  0xd8   :  { %s221_s14 = scalar_lea.hbm %s337_s2, 128 }
  0xd9   :  { %p222_p7 = scmp.ne.s32.totalorder %s337_s2, %s221_s14  ;;  %p225_p8 = scmp.lt.u32.totalorder %s221_s14, %s337_s2 }
  0xdb   :  { %p227_p9 = pnand %p225_p8, %p222_p7 }
  0xdd   :  { %230 = shalt.err (!%p227_p9)
}
  0xde   :  { %126 = dma.vmem_to_hbm [thread:$0]  %s124_s8, 128, %s337_s2, [#allocation6]   ;;  %v115_v21 = vpop.xlane.xlu0 %114 }
  0xdf   :  { %116 = vst.msk [vmem:[#allocation10] sm:$0xff] %vm109_vm0, %v115_v21  ;;  %s231_s21 = scalar_lea.vmem %s134_s10, 128  ;;  %p236_p11 = scmp.lt.s32.totalorder %s134_s10, %s134_s10 }
  0xe0   :  { %p232_p10 = scmp.ne.s32.totalorder %s134_s10, %s231_s21  ;;  %p237_p12 = scmp.lt.s32.totalorder %s231_s21, %s231_s21 }
  0xe2   :  { %p238_p13 = por %p237_p12, %p236_p11 }
  0xe4   :  { %p239_p0 = pnand %p238_p13, %p232_p10 }
  0xe6   :  { %242 = shalt.err (!%p239_p0)
}
  0xe7   :  { %s243_s24 = scalar_lea.hbm %s338_s3, 128 }
  0xe8   :  { %p244_p1 = scmp.ne.s32.totalorder %s338_s3, %s243_s24  ;;  %p247_p2 = scmp.lt.u32.totalorder %s243_s24, %s338_s3 }
  0xea   :  { %p249_p3 = pnand %p247_p2, %p244_p1 }
  0xec   :  { %252 = shalt.err (!%p249_p3)
}
  0xed   :  { %136 = dma.vmem_to_hbm [thread:$0]  %s134_s10, 128, %s338_s3, [#allocation11]  }
  0xee   :  { %257 = dma.done.wait [#allocation6], 128  }
  0xef   :  { %258 = vsyncadd [#allocation6], 4294967168 }
  0xf0   :  { %259 = dma.done.wait [#allocation11], 128  }
  0xf1   :  { %260 = vsyncadd [#allocation11], 4294967168 }
  0xf2   :  { %143 = vsyncpa [#allocation5], 1 }
  0xf3   :  { %144 = vsyncpa [#allocation8], 1 }
  0xf4   :  { %145 = vsyncpa [#allocation6], 1 }
  0xf5   :  { %146 = vsyncpa [#allocation11], 1 }

</bundles_post_ra>
